<compile_context>
chip_gen: v7x
topology: tpu7x:2x2x1
jax: 0.10.0
libtpu: 0.0.40
codegen_flags: <defaults>
</compile_context>

<pallas_src>
import jax
import jax.numpy as jnp
from jax.experimental import pallas as pl
from jax.experimental.pallas import tpu as pltpu


def attention_kernel(apig_ref, fcg_ref, w_ref, out_ref):
    """One grid step: a slab of `bblk` independent problems, both streams.

    apig_ref / fcg_ref: (bblk, N, H)  the two embeddings
    w_ref:              (1, 1, H)     nn.Linear(H, 1).weight (VMEM-resident)
    out_ref:            (bblk, N, H)
    """
    w = w_ref[...].astype(jnp.float32)  # broadcast once per grid step

    acc = None
    # Python-level unroll over the two streams; every op below covers a full
    # (bblk, N, H) slab so per-op overhead is amortized across bblk problems.
    for ref in (apig_ref, fcg_ref):
        x = ref[...].astype(jnp.float32)                              # (bblk, N, H)

        # ---- normalization: min-max rescale only -------------------------
        # The module's z-score followed by min-max rescale is algebraically
        # identical to a plain min-max rescale (the affine z-score cancels),
        # including the max==min -> inf/NaN case.  Two chained single-axis
        # reductions per stat (safe Mosaic lowering) instead of mean/var/std.
        xmin = jnp.min(jnp.min(x, axis=-1, keepdims=True), axis=-2, keepdims=True)
        xmax = jnp.max(jnp.max(x, axis=-1, keepdims=True), axis=-2, keepdims=True)
        inv_range = pl.reciprocal(xmax - xmin)        # one divide per problem
        xn = (x - xmin) * inv_range                                   # (bblk, N, H)

        # ---- attention scores: VPU multiply + lane reduce (no MXU) --------
        # Bias omitted: softmax over rows is invariant to a constant shift.
        scores = jnp.sum(xn * w, axis=-1, keepdims=True)              # (bblk, N, 1)

        # ---- softmax over the row axis (dim=0 of each embedding) ----------
        m = jnp.max(scores, axis=-2, keepdims=True)                   # (bblk, 1, 1)
        e = jnp.exp(scores - m)
        # Exact reciprocal (approx=True would be a free EUP op but ~2^-12
        # relative error is too loose for the 1e-5 check below).
        p = e * pl.reciprocal(jnp.sum(e, axis=-2, keepdims=True))     # (bblk, N, 1)

        term = xn * p                                                 # (bblk, N, H)
        acc = term if acc is None else acc + term

    out_ref[...] = acc.astype(out_ref.dtype)


def _pick_block_rows(batch, n, h, itemsize=4, target_bytes=1 << 20, cap=1024):
    """Problems per grid step: ~1 MiB per input stream per block (well under the
    32 MiB scoped-VMEM default on every generation, incl. v7x's 64 MiB physical,
    with double-buffered 2 inputs + 1 output)."""
    per_problem = max(1, n * h * itemsize)
    bblk = int(max(1, min(cap, target_bytes // per_problem)))
    if batch <= bblk:
        return batch  # single block covering everything; no padding needed
    return bblk


def attention_forward(apig, fcg, weight, bias=None):
    """apig, fcg: (N, H) or (B, N, H); weight: (1, H); bias: (1,) (unused: no-op).

    Returns the attended sum with the same leading shape as the inputs.
    All problems share one pallas_call; the batch axis is the grid axis.
    """
    squeeze = apig.ndim == 2
    if squeeze:
        apig, fcg = apig[None], fcg[None]
    assert apig.shape == fcg.shape and apig.ndim == 3
    B, N, H = apig.shape

    # bias is accepted for API parity with nn.Linear(hidden_dim, 1) but is
    # mathematically a no-op under softmax-over-rows; it never reaches the kernel.
    del bias

    w = weight.reshape(1, 1, H).astype(jnp.float32)

    bblk = _pick_block_rows(B, N, H)
    b_padded = -(-B // bblk) * bblk
    a_in, f_in = apig, fcg
    if b_padded != B:
        pad = ((0, b_padded - B), (0, 0), (0, 0))
        a_in = jnp.pad(a_in, pad)   # padded problems produce NaN rows; sliced off
        f_in = jnp.pad(f_in, pad)

    grid = (b_padded // bblk,)

    out = pl.pallas_call(
        attention_kernel,
        out_shape=jax.ShapeDtypeStruct((b_padded, N, H), jnp.float32),
        grid=grid,
        in_specs=[
            pl.BlockSpec((bblk, N, H), lambda i: (i, 0, 0)),
            pl.BlockSpec((bblk, N, H), lambda i: (i, 0, 0)),
            # shared weight: constant index_map -> stays resident in VMEM
            pl.BlockSpec((1, 1, H), lambda i: (0, 0, 0)),
        ],
        out_specs=pl.BlockSpec((bblk, N, H), lambda i: (i, 0, 0)),
        compiler_params=pltpu.CompilerParams(
            # independent problems per block -> shard across the 2 TCs on v7x
            dimension_semantics=("parallel",)),
    )(a_in, f_in, w)

    out = out[:B]
    return out[0] if squeeze else out


def _reference(apig, fcg, weight, bias):
    # Faithful pure-JAX port of the PyTorch forward for one (N, H) problem,
    # INCLUDING the (algebraically redundant) z-score stage and bias.
    def norm(x):
        x = (x - x.mean()) / x.std(ddof=1)
        return (x - x.min()) / (x.max() - x.min())

    def att(x):
        s = x @ weight.T + bias.reshape(1, 1)
        p = jax.nn.softmax(s, axis=0)
        return x * p

    return att(norm(apig)) + att(norm(fcg))


if __name__ == "__main__":
    B, N, H = 4, 8, 32  # a small batch of problems, seq=8, hidden=32
    key = jax.random.PRNGKey(0)
    k1, k2, k3, k4 = jax.random.split(key, 4)

    apig = jax.random.normal(k1, (B, N, H), dtype=jnp.float32)
    fcg = jax.random.normal(k2, (B, N, H), dtype=jnp.float32)
    # Deterministic init for nn.Linear(hidden_dim, 1): weight (1, H), bias (1,)
    bound = 1.0 / jnp.sqrt(H)
    weight = jax.random.uniform(k3, (1, H), jnp.float32, -bound, bound)
    bias = jax.random.uniform(k4, (1,), jnp.float32, -bound, bound)

    # batched path: one pallas_call, batch axis on the grid
    out = attention_forward(apig, fcg, weight, bias)
    out = jax.block_until_ready(out)

    ref = jax.vmap(lambda a, f: _reference(a, f, weight, bias))(apig, fcg)
    assert out.shape == (B, N, H)
    assert jnp.allclose(out, ref, atol=1e-5, rtol=1e-5), "batched mismatch vs reference"

    # single-problem path (matches the original module's call signature)
    out1 = attention_forward(apig[0], fcg[0], weight, bias)
    out1 = jax.block_until_ready(out1)
    assert out1.shape == (N, H)
    assert jnp.allclose(out1, ref[0], atol=1e-5, rtol=1e-5), "single mismatch vs reference"

    print("KERNEL_OK")
</pallas_src>

<mosaic_0001>
module attributes {stable_mosaic.version = 11 : i64} {
  func.func @attention_kernel(%arg0: i32, %arg1: memref<4x8x32xf32, #tpu.memory_space<vmem>>, %arg2: memref<4x8x32xf32, #tpu.memory_space<vmem>>, %arg3: memref<1x1x32xf32, #tpu.memory_space<vmem>>, %arg4: memref<4x8x32xf32, #tpu.memory_space<vmem>>) attributes {dimension_semantics = [#tpu.dimension_semantics<parallel>], iteration_bounds = array<i64: 1>, scalar_prefetch = 0 : i64, scratch_operands = 0 : i64, tpu.core_type = #tpu.core_type<tc>, window_params = [{transform_indices = @transform_0, window_bounds = array<i64: 4, 8, 32>}, {transform_indices = @transform_1, window_bounds = array<i64: 4, 8, 32>}, {pipeline_mode = #tpu.pipeline_mode<synchronous>, transform_indices = @transform_2, window_bounds = array<i64: 1, 1, 32>}, {transform_indices = @transform_3, window_bounds = array<i64: 4, 8, 32>}]} {
    %c0 = arith.constant 0 : index
    %c0_0 = arith.constant 0 : index
    %c0_1 = arith.constant 0 : index
    %0 = vector.load %arg3[%c0, %c0_0, %c0_1] : memref<1x1x32xf32, #tpu.memory_space<vmem>>, vector<1x1x32xf32>
    %c0_2 = arith.constant 0 : index
    %c0_3 = arith.constant 0 : index
    %c0_4 = arith.constant 0 : index
    %1 = vector.load %arg1[%c0_2, %c0_3, %c0_4] : memref<4x8x32xf32, #tpu.memory_space<vmem>>, vector<4x8x32xf32>
    %cst = arith.constant dense<0x7F800000> : vector<4x8xf32>
    %2 = vector.multi_reduction <minimumf>, %1, %cst [2] : vector<4x8x32xf32> to vector<4x8xf32>
    %3 = vector.shape_cast %2 : vector<4x8xf32> to vector<4x8x1xf32>
    %cst_5 = arith.constant dense<0x7F800000> : vector<4x1xf32>
    %4 = vector.multi_reduction <minimumf>, %3, %cst_5 [1] : vector<4x8x1xf32> to vector<4x1xf32>
    %5 = vector.shape_cast %4 : vector<4x1xf32> to vector<4x1x1xf32>
    %cst_6 = arith.constant dense<0xFF800000> : vector<4x8xf32>
    %6 = vector.multi_reduction <maximumf>, %1, %cst_6 [2] : vector<4x8x32xf32> to vector<4x8xf32>
    %7 = vector.shape_cast %6 : vector<4x8xf32> to vector<4x8x1xf32>
    %cst_7 = arith.constant dense<0xFF800000> : vector<4x1xf32>
    %8 = vector.multi_reduction <maximumf>, %7, %cst_7 [1] : vector<4x8x1xf32> to vector<4x1xf32>
    %9 = vector.shape_cast %8 : vector<4x1xf32> to vector<4x1x1xf32>
    %10 = arith.subf %9, %5 : vector<4x1x1xf32>
    %11 = tpu.reciprocal %10 : vector<4x1x1xf32> -> vector<4x1x1xf32>
    %12 = vector.broadcast %5 : vector<4x1x1xf32> to vector<4x8x32xf32>
    %13 = arith.subf %1, %12 : vector<4x8x32xf32>
    %14 = vector.broadcast %11 : vector<4x1x1xf32> to vector<4x8x32xf32>
    %15 = arith.mulf %13, %14 : vector<4x8x32xf32>
    %16 = vector.broadcast %0 : vector<1x1x32xf32> to vector<4x8x32xf32>
    %17 = arith.mulf %15, %16 : vector<4x8x32xf32>
    %cst_8 = arith.constant dense<0.000000e+00> : vector<4x8xf32>
    %18 = vector.multi_reduction <add>, %17, %cst_8 [2] : vector<4x8x32xf32> to vector<4x8xf32>
    %19 = vector.shape_cast %18 : vector<4x8xf32> to vector<4x8x1xf32>
    %cst_9 = arith.constant dense<0xFF800000> : vector<4x1xf32>
    %20 = vector.multi_reduction <maximumf>, %19, %cst_9 [1] : vector<4x8x1xf32> to vector<4x1xf32>
    %21 = vector.shape_cast %20 : vector<4x1xf32> to vector<4x1x1xf32>
    %22 = vector.broadcast %21 : vector<4x1x1xf32> to vector<4x8x1xf32>
    %23 = arith.subf %19, %22 : vector<4x8x1xf32>
    %24 = math.exp %23 : vector<4x8x1xf32>
    %cst_10 = arith.constant dense<0.000000e+00> : vector<4x1xf32>
    %25 = vector.multi_reduction <add>, %24, %cst_10 [1] : vector<4x8x1xf32> to vector<4x1xf32>
    %26 = vector.shape_cast %25 : vector<4x1xf32> to vector<4x1x1xf32>
    %27 = tpu.reciprocal %26 : vector<4x1x1xf32> -> vector<4x1x1xf32>
    %28 = vector.broadcast %27 : vector<4x1x1xf32> to vector<4x8x1xf32>
    %29 = arith.mulf %24, %28 : vector<4x8x1xf32>
    %30 = vector.broadcast %29 : vector<4x8x1xf32> to vector<4x8x32xf32>
    %31 = arith.mulf %15, %30 : vector<4x8x32xf32>
    %c0_11 = arith.constant 0 : index
    %c0_12 = arith.constant 0 : index
    %c0_13 = arith.constant 0 : index
    %32 = vector.load %arg2[%c0_11, %c0_12, %c0_13] : memref<4x8x32xf32, #tpu.memory_space<vmem>>, vector<4x8x32xf32>
    %cst_14 = arith.constant dense<0x7F800000> : vector<4x8xf32>
    %33 = vector.multi_reduction <minimumf>, %32, %cst_14 [2] : vector<4x8x32xf32> to vector<4x8xf32>
    %34 = vector.shape_cast %33 : vector<4x8xf32> to vector<4x8x1xf32>
    %cst_15 = arith.constant dense<0x7F800000> : vector<4x1xf32>
    %35 = vector.multi_reduction <minimumf>, %34, %cst_15 [1] : vector<4x8x1xf32> to vector<4x1xf32>
    %36 = vector.shape_cast %35 : vector<4x1xf32> to vector<4x1x1xf32>
    %cst_16 = arith.constant dense<0xFF800000> : vector<4x8xf32>
    %37 = vector.multi_reduction <maximumf>, %32, %cst_16 [2] : vector<4x8x32xf32> to vector<4x8xf32>
    %38 = vector.shape_cast %37 : vector<4x8xf32> to vector<4x8x1xf32>
    %cst_17 = arith.constant dense<0xFF800000> : vector<4x1xf32>
    %39 = vector.multi_reduction <maximumf>, %38, %cst_17 [1] : vector<4x8x1xf32> to vector<4x1xf32>
    %40 = vector.shape_cast %39 : vector<4x1xf32> to vector<4x1x1xf32>
    %41 = arith.subf %40, %36 : vector<4x1x1xf32>
    %42 = tpu.reciprocal %41 : vector<4x1x1xf32> -> vector<4x1x1xf32>
    %43 = vector.broadcast %36 : vector<4x1x1xf32> to vector<4x8x32xf32>
    %44 = arith.subf %32, %43 : vector<4x8x32xf32>
    %45 = vector.broadcast %42 : vector<4x1x1xf32> to vector<4x8x32xf32>
    %46 = arith.mulf %44, %45 : vector<4x8x32xf32>
    %47 = vector.broadcast %0 : vector<1x1x32xf32> to vector<4x8x32xf32>
    %48 = arith.mulf %46, %47 : vector<4x8x32xf32>
    %cst_18 = arith.constant dense<0.000000e+00> : vector<4x8xf32>
    %49 = vector.multi_reduction <add>, %48, %cst_18 [2] : vector<4x8x32xf32> to vector<4x8xf32>
    %50 = vector.shape_cast %49 : vector<4x8xf32> to vector<4x8x1xf32>
    %cst_19 = arith.constant dense<0xFF800000> : vector<4x1xf32>
    %51 = vector.multi_reduction <maximumf>, %50, %cst_19 [1] : vector<4x8x1xf32> to vector<4x1xf32>
    %52 = vector.shape_cast %51 : vector<4x1xf32> to vector<4x1x1xf32>
    %53 = vector.broadcast %52 : vector<4x1x1xf32> to vector<4x8x1xf32>
    %54 = arith.subf %50, %53 : vector<4x8x1xf32>
    %55 = math.exp %54 : vector<4x8x1xf32>
    %cst_20 = arith.constant dense<0.000000e+00> : vector<4x1xf32>
    %56 = vector.multi_reduction <add>, %55, %cst_20 [1] : vector<4x8x1xf32> to vector<4x1xf32>
    %57 = vector.shape_cast %56 : vector<4x1xf32> to vector<4x1x1xf32>
    %58 = tpu.reciprocal %57 : vector<4x1x1xf32> -> vector<4x1x1xf32>
    %59 = vector.broadcast %58 : vector<4x1x1xf32> to vector<4x8x1xf32>
    %60 = arith.mulf %55, %59 : vector<4x8x1xf32>
    %61 = vector.broadcast %60 : vector<4x8x1xf32> to vector<4x8x32xf32>
    %62 = arith.mulf %46, %61 : vector<4x8x32xf32>
    %63 = arith.addf %31, %62 : vector<4x8x32xf32>
    %c0_21 = arith.constant 0 : index
    %c0_22 = arith.constant 0 : index
    %c0_23 = arith.constant 0 : index
    %64 = vector.load %arg4[%c0_21, %c0_22, %c0_23] : memref<4x8x32xf32, #tpu.memory_space<vmem>>, vector<4x8x32xf32>
    tpu.vector_store %arg4[%c0_21, %c0_22, %c0_23], %63 {strides = array<i32>} : memref<4x8x32xf32, #tpu.memory_space<vmem>>, vector<4x8x32xf32>,
    return
  }
  func.func @transform_0(%arg0: i32) -> (i32, i32, i32) {
    %c0_i32 = arith.constant 0 : i32
    %c0_i32_0 = arith.constant 0 : i32
    %c0_i32_1 = arith.constant 0 : i32
    return %arg0, %c0_i32, %c0_i32_0 : i32, i32, i32
  }
  func.func @transform_1(%arg0: i32) -> (i32, i32, i32) {
    %c0_i32 = arith.constant 0 : i32
    %c0_i32_0 = arith.constant 0 : i32
    %c0_i32_1 = arith.constant 0 : i32
    return %arg0, %c0_i32, %c0_i32_0 : i32, i32, i32
  }
  func.func @transform_2(%arg0: i32) -> (i32, i32, i32) {
    %c0_i32 = arith.constant 0 : i32
    %c0_i32_0 = arith.constant 0 : i32
    %c0_i32_1 = arith.constant 0 : i32
    %c0_i32_2 = arith.constant 0 : i32
    return %c0_i32, %c0_i32_0, %c0_i32_1 : i32, i32, i32
  }
  func.func @transform_3(%arg0: i32) -> (i32, i32, i32) {
    %c0_i32 = arith.constant 0 : i32
    %c0_i32_0 = arith.constant 0 : i32
    %c0_i32_1 = arith.constant 0 : i32
    return %arg0, %c0_i32, %c0_i32_0 : i32, i32, i32
  }
}

</mosaic_0001>

<bundles_post_ra>
// kernel: tpu_custom_call.1
= control target key start
LH: loop header
LB: loop body
LE: loop exit
PB: predicated region body
PF: predicated region fallthrough
CT: control target
= control target key end

     0   :  { %8 = vsyncpa [#allocation3], 0  ;;  %s772_s0 = inlined_call_operand.hbm [shape: f32[4,8,32], index: 0, kind: input, shape index: {}]   ;;  %s773_s1 = inlined_call_operand.hbm [shape: f32[4,8,32], index: 1, kind: input, shape index: {}]   ;;  %s774_s2 = inlined_call_operand.vmem [shape: f32[1,1,32], index: 2, kind: input, shape index: {}]   ;;  %s775_s3 = inlined_call_operand.hbm [shape: f32[4,8,32], index: 3, kind: output, shape index: {}]  }
   0x1   :  { %9 = vsyncpa [#allocation6], 0 }
   0x2   :  { %10 = vsyncpa [#allocation4], 0  ;;  %s563_s12 = smov [#allocation2]   ;;  %s491_s16 = scalar_lea.hbm %s772_s0, 512 }
   0x3   :  { %s16_s13 = sshll.u32 %s563_s12, 4  ;;  %p492_p0 = scmp.ne.s32.totalorder %s772_s0, %s491_s16  ;;  %s17_s13 = int_to_ptr.vmem [resolvable:$true] %s16_s13 }
   0x4   :  { %p495_p1 = scmp.lt.u32.totalorder %s491_s16, %s772_s0 }
   0x6   :  { %p497_p2 = pnand %p495_p1, %p492_p0 }
   0x8   :  { %500 = shalt.err (!%p497_p2)
}
   0x9   :  { %s501_s21 = scalar_lea.vmem %s17_s13, 512  ;;  %p506_p4 = scmp.lt.s32.totalorder %s17_s13, %s17_s13 }
   0xa   :  { %p502_p3 = scmp.ne.s32.totalorder %s17_s13, %s501_s21  ;;  %p507_p5 = scmp.lt.s32.totalorder %s501_s21, %s501_s21 }
   0xc   :  { %p508_p6 = por %p507_p5, %p506_p4 }
   0xe   :  { %p509_p7 = pnand %p508_p6, %p502_p3 }
  0x10   :  { %512 = shalt.err (!%p509_p7)
}
  0x11   :  { %s564_s22 = smov 128   ;;  %s565_s23 = smov 8  }
  0x12   :  { %22 = dma.hbm_to_vmem [thread:$0]  %s772_s0, 512, %s17_s13, [#allocation3], %s564_s22, %s564_s22, %s565_s23  }
  0x13   :  { %s566_s26 = smov [#allocation5]   ;;  %s513_s30 = scalar_lea.hbm %s773_s1, 512 }
  0x14   :  { %s28_s27 = sshll.u32 %s566_s26, 4  ;;  %p514_p8 = scmp.ne.s32.totalorder %s773_s1, %s513_s30  ;;  %s29_s27 = int_to_ptr.vmem [resolvable:$true] %s28_s27 }
  0x15   :  { %p517_p9 = scmp.lt.u32.totalorder %s513_s30, %s773_s1 }
  0x17   :  { %p519_p10 = pnand %p517_p9, %p514_p8 }
  0x19   :  { %522 = shalt.err (!%p519_p10)
}
  0x1a   :  { %s523_s8 = scalar_lea.vmem %s29_s27, 512  ;;  %p528_p12 = scmp.lt.s32.totalorder %s29_s27, %s29_s27 }
  0x1b   :  { %p524_p11 = scmp.ne.s32.totalorder %s29_s27, %s523_s8  ;;  %p529_p13 = scmp.lt.s32.totalorder %s523_s8, %s523_s8 }
  0x1d   :  { %p530_p0 = por %p529_p13, %p528_p12 }
  0x1f   :  { %p531_p1 = pnand %p530_p0, %p524_p11 }
  0x21   :  { %534 = shalt.err (!%p531_p1)
}
  0x22   :  { %34 = dma.hbm_to_vmem [thread:$0]  %s773_s1, 512, %s29_s27, [#allocation6], %s564_s22, %s564_s22, %s565_s23  }
  0x23   :  { %557 = dma.done.wait [#allocation3], 512  }
  0x24   :  { %558 = vsyncadd [#allocation3], 4294966784 }
  0x25   :  { %559 = dma.done.wait [#allocation6], 512  }
  0x26   :  { %560 = vsyncadd [#allocation6], 4294966784  ;;  %vm48_vm0 = vcmask 261120   ;;  %v618_v0 = vld [vmem:[#allocation2 + $0x10] sm:$0xff]  ;;  %v620_v1 = vld [vmem:[#allocation2] sm:$0xff] }
  0x27   :  { %v622_v2 = vld [vmem:[#allocation2 + $0x18] sm:$0xff]  ;;  %v55_v3 = vsel %vm48_vm0, %v618_v0, inf  ;;  %v49_v4 = vsel %vm48_vm0, %v620_v1, inf  ;;  %v628_v5 = vld [vmem:[#allocation2 + $0x8] sm:$0xff]  ;;  %v85_v9 = vsel %vm48_vm0, %v620_v1, -inf  ;;  %v91_v11 = vsel %vm48_vm0, %v618_v0, -inf }
  0x28   :  { %56 = vmin.xlane.f32.xlu1 %v55_v3  ;;  %50 = vmin.xlane.f32.xlu0 %v49_v4  ;;  %v58_v6 = vsel %vm48_vm0, %v622_v2, inf  ;;  %v52_v7 = vsel %vm48_vm0, %v628_v5, inf  ;;  %v88_v8 = vsel %vm48_vm0, %v628_v5, -inf  ;;  %v94_v10 = vsel %vm48_vm0, %v622_v2, -inf  ;;  %v642_v12 = vld [vmem:[#allocation5 + $0x8] sm:$0xff]  ;;  %v644_v13 = vld [vmem:[#allocation5] sm:$0xff] }
  0x29   :  { %v238_v14 = vsel %vm48_vm0, %v642_v12, inf  ;;  %v235_v15 = vsel %vm48_vm0, %v644_v13, inf  ;;  %v650_v16 = vld [vmem:[#allocation5 + $0x18] sm:$0xff]  ;;  %v652_v17 = vld [vmem:[#allocation5 + $0x10] sm:$0xff]  ;;  %v274_v20 = vsel %vm48_vm0, %v642_v12, -inf  ;;  %v271_v21 = vsel %vm48_vm0, %v644_v13, -inf }
  0x2a   :  { %v244_v18 = vsel %vm48_vm0, %v650_v16, inf  ;;  %v241_v19 = vsel %vm48_vm0, %v652_v17, inf  ;;  %v280_v22 = vsel %vm48_vm0, %v650_v16, -inf  ;;  %v277_v23 = vsel %vm48_vm0, %v652_v17, -inf }
  0x2c   :  { %59 = vmin.xlane.f32.xlu1 %v58_v6  ;;  %53 = vmin.xlane.f32.xlu0 %v52_v7 }
  0x30   :  { %89 = vmax.xlane.f32.xlu1 %v88_v8  ;;  %86 = vmax.xlane.f32.xlu0 %v85_v9 }
  0x34   :  { %95 = vmax.xlane.f32.xlu1 %v94_v10  ;;  %92 = vmax.xlane.f32.xlu0 %v91_v11 }
  0x38   :  { %239 = vmin.xlane.f32.xlu1 %v238_v14  ;;  %236 = vmin.xlane.f32.xlu0 %v235_v15 }
  0x3c   :  { %245 = vmin.xlane.f32.xlu1 %v244_v18  ;;  %242 = vmin.xlane.f32.xlu0 %v241_v19 }
  0x40   :  { %275 = vmax.xlane.f32.xlu1 %v274_v20  ;;  %272 = vmax.xlane.f32.xlu0 %v271_v21 }
  0x44   :  { %281 = vmax.xlane.f32.xlu1 %v280_v22  ;;  %278 = vmax.xlane.f32.xlu0 %v277_v23 }
  0xb5   :  { %v57_v24 = vpop.xlane.xlu1 %56  ;;  %v51_v25 = vpop.xlane.xlu0 %50 }
  0xb6   :  { %v61_v26 = vrot.slane %v51_v25, 4  ;;  %v73_v27 = vrot.slane %v57_v24, 4 }
  0xb8   :  { %v62_v28 = vmin.f32 %v51_v25, %v61_v26  ;;  %v74_v33 = vmin.f32 %v57_v24, %v73_v27 }
  0xb9   :  { %v60_v29 = vpop.xlane.xlu1 %59  ;;  %v54_v30 = vpop.xlane.xlu0 %53 }
  0xba   :  { %v79_v31 = vrot.slane %v60_v29, 4  ;;  %v67_v32 = vrot.slane %v54_v30, 4  ;;  %v63_v34 = vrot.slane %v62_v28, 2  ;;  %v75_v40 = vrot.slane %v74_v33, 2 }
  0xbc   :  { %v80_v35 = vmin.f32 %v60_v29, %v79_v31  ;;  %v68_v36 = vmin.f32 %v54_v30, %v67_v32  ;;  %v64_v41 = vmin.f32 %v62_v28, %v63_v34  ;;  %v76_v52 = vmin.f32 %v74_v33, %v75_v40 }
  0xbd   :  { %v90_v37 = vpop.xlane.xlu1 %89  ;;  %v87_v38 = vpop.xlane.xlu0 %86 }
  0xbe   :  { %v69_v39 = vrot.slane %v68_v36, 2  ;;  %v103_v42 = vrot.slane %v90_v37, 4  ;;  %v97_v43 = vrot.slane %v87_v38, 4  ;;  %v81_v44 = vrot.slane %v80_v35, 2 }
  0xbf   :  { %v65_v53 = vrot.slane %v64_v41, 1  ;;  %v77_v8 = vrot.slane %v76_v52, 1 }
  0xc0   :  { %v70_v45 = vmin.f32 %v68_v36, %v69_v39  ;;  %v104_v46 = vmax.f32 %v90_v37, %v103_v42  ;;  %v98_v47 = vmax.f32 %v87_v38, %v97_v43  ;;  %v82_v56 = vmin.f32 %v80_v35, %v81_v44 }
  0xc1   :  { %v96_v48 = vpop.xlane.xlu1 %95  ;;  %v93_v49 = vpop.xlane.xlu0 %92  ;;  %v666_v9 = vmin.f32 %v64_v41, %v65_v53  ;;  %v672_v33 = vmin.f32 %v76_v52, %v77_v8 }
  0xc2   :  { %v115_v50 = vrot.slane %v96_v48, 4  ;;  %v109_v51 = vrot.slane %v93_v49, 4  ;;  %v105_v54 = vrot.slane %v104_v46, 2  ;;  %v99_v55 = vrot.slane %v98_v47, 2 }
  0xc3   :  { %v71_v59 = vrot.slane %v70_v45, 1  ;;  %v83_v14 = vrot.slane %v82_v56, 1 }
  0xc4   :  { %v116_v57 = vmax.f32 %v96_v48, %v115_v50  ;;  %v110_v58 = vmax.f32 %v93_v49, %v109_v51  ;;  %v106_v60 = vmax.f32 %v104_v46, %v105_v54  ;;  %v100_v61 = vmax.f32 %v98_v47, %v99_v55 }
  0xc5   :  { %v240_v62 = vpop.xlane.xlu1 %239  ;;  %v237_v63 = vpop.xlane.xlu0 %236  ;;  %v668_v20 = vmin.f32 %v70_v45, %v71_v59  ;;  %v674_v34 = vmin.f32 %v82_v56, %v83_v14 }
  0xc6   :  { %v117_v3 = vrot.slane %v116_v57, 2  ;;  %v111_v4 = vrot.slane %v110_v58, 2  ;;  %v253_v6 = vrot.slane %v240_v62, 4  ;;  %v247_v7 = vrot.slane %v237_v63, 4 }
  0xc7   :  { %v107_v10 = vrot.slane %v106_v60, 1  ;;  %v101_v11 = vrot.slane %v100_v61, 1 }
  0xc8   :  { %v118_v15 = vmax.f32 %v116_v57, %v117_v3  ;;  %v112_v18 = vmax.f32 %v110_v58, %v111_v4  ;;  %v254_v19 = vmin.f32 %v240_v62, %v253_v6  ;;  %v248_v23 = vmin.f32 %v237_v63, %v247_v7 }
  0xc9   :  { %v108_v21 = vmax.f32 %v106_v60, %v107_v10  ;;  %v102_v22 = vmax.f32 %v100_v61, %v101_v11  ;;  %v246_v24 = vpop.xlane.xlu1 %245  ;;  %v243_v25 = vpop.xlane.xlu0 %242  ;;  %v129_v4 = vsub.f32 %v620_v1, %v666_v9  ;;  %v131_v6 = vsub.f32 %v618_v0, %v672_v33  ;;  %v437_v0 = vld [vmem:[%s774_s2] ss:$0 sm:$0xff]  ;;  %s567_s2 = smov [#allocation7]  }
  0xca   :  { %v119_v26 = vrot.slane %v118_v15, 1  ;;  %v113_v27 = vrot.slane %v112_v18, 1  ;;  %v255_v28 = vrot.slane %v254_v19, 2  ;;  %v265_v31 = vrot.slane %v246_v24, 4  ;;  %s424_s11 = sshll.u32 %s567_s2, 4  ;;  %s425_s11 = int_to_ptr.vmem [resolvable:$true] %s424_s11 }
  0xcb   :  { %v122_v29 = vsub.f32 %v108_v21, %v668_v20  ;;  %v121_v30 = vsub.f32 %v102_v22, %v666_v9  ;;  %v259_v32 = vrot.slane %v243_v25, 4  ;;  %v249_v37 = vrot.slane %v248_v23, 2  ;;  %s535_s12 = scalar_lea.vmem %s425_s11, 512  ;;  %p540_p3 = scmp.lt.s32.totalorder %s425_s11, %s425_s11 }
  0xcc   :  { %v120_v35 = vmax.f32 %v118_v15, %v119_v26  ;;  %v114_v36 = vmax.f32 %v112_v18, %v113_v27  ;;  %v266_v38 = vmin.f32 %v246_v24, %v265_v31  ;;  %v256_v44 = vmin.f32 %v254_v19, %v255_v28  ;;  %p536_p2 = scmp.ne.s32.totalorder %s425_s11, %s535_s12  ;;  %p541_p4 = scmp.lt.s32.totalorder %s535_s12, %s535_s12 }
  0xcd   :  { %443 = vrcp.f32 %v122_v29  ;;  %v260_v39 = vmin.f32 %v243_v25, %v259_v32  ;;  %v276_v40 = vpop.xlane.xlu1 %275  ;;  %v273_v41 = vpop.xlane.xlu0 %272  ;;  %v250_v49 = vmin.f32 %v248_v23, %v249_v37  ;;  %v130_v19 = vsub.f32 %v628_v5, %v668_v20 }
  0xce   :  { %445 = vrcp.f32 %v121_v30  ;;  %v124_v42 = vsub.f32 %v120_v35, %v674_v34  ;;  %v123_v43 = vsub.f32 %v114_v36, %v672_v33  ;;  %v267_v45 = vrot.slane %v266_v38, 2  ;;  %p542_p5 = por %p541_p4, %p540_p3 }
  0xcf   :  { %v261_v46 = vrot.slane %v260_v39, 2  ;;  %v289_v47 = vrot.slane %v276_v40, 4  ;;  %v283_v48 = vrot.slane %v273_v41, 4  ;;  %v257_v57 = vrot.slane %v256_v44, 1 }
  0xd0   :  { %447 = vrcp.f32 %v124_v42  ;;  %v268_v50 = vmin.f32 %v266_v38, %v267_v45  ;;  %v251_v63 = vrot.slane %v250_v49, 1  ;;  %v132_v21 = vsub.f32 %v622_v2, %v674_v34  ;;  %p543_p6 = pnand %p542_p5, %p536_p2 }
  0xd1   :  { %449 = vrcp.f32 %v123_v43  ;;  %v282_v51 = vpop.xlane.xlu1 %281  ;;  %v279_v52 = vpop.xlane.xlu0 %278  ;;  %v290_v53 = vmax.f32 %v276_v40, %v289_v47  ;;  %v284_v54 = vmax.f32 %v273_v41, %v283_v48  ;;  %v262_v58 = vmin.f32 %v260_v39, %v261_v46 }
  0xd2   :  { %v301_v55 = vrot.slane %v282_v51, 4  ;;  %v295_v56 = vrot.slane %v279_v52, 4  ;;  %v269_v3 = vrot.slane %v268_v50, 1  ;;  %v258_v15 = vmin.f32 %v256_v44, %v257_v57 }
  0xd3   :  { %v291_v59 = vrot.slane %v290_v53, 2  ;;  %v285_v60 = vrot.slane %v284_v54, 2  ;;  %v263_v18 = vrot.slane %v262_v58, 1  ;;  %v252_v25 = vmin.f32 %v250_v49, %v251_v63 }
  0xd4   :  { %v302_v61 = vmax.f32 %v282_v51, %v301_v55  ;;  %v296_v62 = vmax.f32 %v279_v52, %v295_v56  ;;  %v270_v26 = vmin.f32 %v268_v50, %v269_v3  ;;  %v316_v49 = vsub.f32 %v642_v12, %v258_v15 }
  0xd5   :  { %v292_v7 = vmax.f32 %v290_v53, %v291_v59  ;;  %v286_v8 = vmax.f32 %v284_v54, %v285_v60  ;;  %v264_v32 = vmin.f32 %v262_v58, %v263_v18  ;;  %v315_v51 = vsub.f32 %v644_v13, %v252_v25 }
  0xd6   :  { %v303_v10 = vrot.slane %v302_v61, 2  ;;  %v297_v11 = vrot.slane %v296_v62, 2  ;;  %v318_v54 = vsub.f32 %v650_v16, %v270_v26 }
  0xd7   :  { %v444_v14 = vpop.eup %443  ;;  %v293_v23 = vrot.slane %v292_v7, 1  ;;  %v287_v24 = vrot.slane %v286_v8, 1  ;;  %v317_v57 = vsub.f32 %v652_v17, %v264_v32 }
  0xd8   :  { %v446_v22 = vpop.eup %445  ;;  %v304_v1 = vmax.f32 %v302_v61, %v303_v10  ;;  %v298_v9 = vmax.f32 %v296_v62, %v297_v11  ;;  %v689_v27 = vmul.f32 %v444_v14, %v130_v19 }
  0xd9   :  { %v691_v28 = vmul.f32 %v446_v22, %v129_v4  ;;  %v294_v5 = vmax.f32 %v292_v7, %v293_v23  ;;  %v288_v20 = vmax.f32 %v286_v8, %v287_v24 }
  0xda   :  { %v448_v29 = vpop.eup %447  ;;  %v305_v30 = vrot.slane %v304_v1, 1  ;;  %v299_v2 = vrot.slane %v298_v9, 1  ;;  %v144_v33 = vmul.f32 %v437_v0, %v689_v27 }
  0xdb   :  { %v450_v31 = vpop.eup %449  ;;  %v143_v34 = vmul.f32 %v437_v0, %v691_v28  ;;  %v695_v35 = vmul.f32 %v448_v29, %v132_v21  ;;  %v308_v36 = vsub.f32 %v294_v5, %v258_v15  ;;  %v307_v37 = vsub.f32 %v288_v20, %v252_v25 }
  0xdc   :  { %v306_v38 = vmax.f32 %v304_v1, %v305_v30  ;;  %v300_v39 = vmax.f32 %v298_v9, %v299_v2  ;;  %v150_v40 = vsel %vm48_vm0, %v144_v33, 0.0  ;;  %v700_v43 = vmul.f32 %v450_v31, %v131_v6 }
  0xdd   :  { %v147_v41 = vsel %vm48_vm0, %v143_v34, 0.0  ;;  %v146_v42 = vmul.f32 %v437_v0, %v695_v35  ;;  %451 = vrcp.f32 %v308_v36  ;;  %151 = vadd.xlane.f32.xlu1 %v150_v40 }
  0xde   :  { %v310_v44 = vsub.f32 %v306_v38, %v270_v26  ;;  %v309_v45 = vsub.f32 %v300_v39, %v264_v32  ;;  %148 = vadd.xlane.f32.xlu0 %v147_v41  ;;  %453 = vrcp.f32 %v307_v37  ;;  %v145_v47 = vmul.f32 %v437_v0, %v700_v43 }
  0xdf   :  { %v156_v46 = vsel %vm48_vm0, %v146_v42, 0.0 }
  0xe0   :  { %455 = vrcp.f32 %v310_v44  ;;  %v153_v48 = vsel %vm48_vm0, %v145_v47, 0.0 }
  0xe1   :  { %457 = vrcp.f32 %v309_v45  ;;  %157 = vadd.xlane.f32.xlu1 %v156_v46 }
  0xe2   :  { %154 = vadd.xlane.f32.xlu0 %v153_v48 }
  0xe7   :  { %v452_v50 = vpop.eup %451 }
  0xe8   :  { %v454_v52 = vpop.eup %453  ;;  %v707_v53 = vmul.f32 %v452_v50, %v316_v49 }
  0xe9   :  { %v710_v56 = vmul.f32 %v454_v52, %v315_v51 }
  0xea   :  { %v456_v55 = vpop.eup %455  ;;  %v324_v59 = vmul.f32 %v437_v0, %v707_v53 }
  0xeb   :  { %v458_v58 = vpop.eup %457  ;;  %v714_v60 = vmul.f32 %v456_v55, %v318_v54  ;;  %v323_v12 = vmul.f32 %v437_v0, %v710_v56 }
  0xec   :  { %v717_v61 = vmul.f32 %v458_v58, %v317_v57  ;;  %v330_v13 = vsel %vm48_vm0, %v324_v59, 0.0 }
  0xed   :  { %v326_v62 = vmul.f32 %v437_v0, %v714_v60  ;;  %331 = vadd.xlane.f32.xlu1 %v330_v13  ;;  %v327_v16 = vsel %vm48_vm0, %v323_v12, 0.0 }
  0xee   :  { %v325_v63 = vmul.f32 %v437_v0, %v717_v61  ;;  %328 = vadd.xlane.f32.xlu0 %v327_v16 }
  0xef   :  { %v336_v17 = vsel %vm48_vm0, %v326_v62, 0.0 }
  0xf0   :  { %v333_v3 = vsel %vm48_vm0, %v325_v63, 0.0 }
  0xf1   :  { %337 = vadd.xlane.f32.xlu1 %v336_v17 }
  0xf2   :  { %334 = vadd.xlane.f32.xlu0 %v333_v3 }
 0x16a   :  { %v152_v4 = vpop.xlane.xlu1 %151 }
 0x16b   :  { %v149_v6 = vpop.xlane.xlu0 %148  ;;  %v165_v7 = vrot.slane %v152_v4, 4 }
 0x16c   :  { %v159_v8 = vrot.slane %v149_v6, 4 }
 0x16d   :  { %v166_v10 = vmax.f32 %v152_v4, %v165_v7 }
 0x16e   :  { %v160_v11 = vmax.f32 %v149_v6, %v159_v8  ;;  %v158_v14 = vpop.xlane.xlu1 %157 }
 0x16f   :  { %v155_v15 = vpop.xlane.xlu0 %154  ;;  %v167_v18 = vrot.slane %v166_v10, 2  ;;  %v177_v21 = vrot.slane %v158_v14, 4 }
 0x170   :  { %v161_v19 = vrot.slane %v160_v11, 2  ;;  %v171_v22 = vrot.slane %v155_v15, 4 }
 0x171   :  { %v168_v23 = vmax.f32 %v166_v10, %v167_v18  ;;  %v178_v1 = vmax.f32 %v158_v14, %v177_v21 }
 0x172   :  { %v162_v24 = vmax.f32 %v160_v11, %v161_v19  ;;  %v172_v9 = vmax.f32 %v155_v15, %v171_v22 }
 0x173   :  { %v169_v0 = vrot.slane %v168_v23, 1  ;;  %v179_v26 = vrot.slane %v178_v1, 2 }
 0x174   :  { %v163_v25 = vrot.slane %v162_v24, 1  ;;  %v173_v29 = vrot.slane %v172_v9, 2 }
 0x175   :  { %v170_v5 = vmax.f32 %v168_v23, %v169_v0  ;;  %v180_v30 = vmax.f32 %v178_v1, %v179_v26 }
 0x176   :  { %v164_v20 = vmax.f32 %v162_v24, %v163_v25  ;;  %v174_v2 = vmax.f32 %v172_v9, %v173_v29 }
 0x177   :  { %v184_v31 = vsub.f32 %v152_v4, %v170_v5  ;;  %v181_v33 = vrot.slane %v180_v30, 1 }
 0x178   :  { %v183_v32 = vsub.f32 %v149_v6, %v164_v20  ;;  %v175_v34 = vrot.slane %v174_v2, 1 }
 0x179   :  { %v189_v36 = vmul.f32 1.442695, %v184_v31  ;;  %v182_v38 = vmax.f32 %v180_v30, %v181_v33 }
 0x17a   :  { %v187_v37 = vmul.f32 1.442695, %v183_v32  ;;  %v176_v39 = vmax.f32 %v174_v2, %v175_v34  ;;  %v332_v40 = vpop.xlane.xlu1 %331 }
 0x17b   :  { %459 = vpow2.f32 %v189_v36  ;;  %v186_v41 = vsub.f32 %v158_v14, %v182_v38  ;;  %v345_v44 = vrot.slane %v332_v40, 4  ;;  %v329_v45 = vpop.xlane.xlu0 %328 }
 0x17c   :  { %v185_v42 = vsub.f32 %v155_v15, %v176_v39  ;;  %461 = vpow2.f32 %v187_v37  ;;  %v339_v46 = vrot.slane %v329_v45, 4 }
 0x17d   :  { %v193_v47 = vmul.f32 1.442695, %v186_v41  ;;  %v346_v49 = vmax.f32 %v332_v40, %v345_v44 }
 0x17e   :  { %v191_v48 = vmul.f32 1.442695, %v185_v42  ;;  %v340_v50 = vmax.f32 %v329_v45, %v339_v46  ;;  %v338_v51 = vpop.xlane.xlu1 %337 }
 0x17f   :  { %463 = vpow2.f32 %v193_v47  ;;  %v347_v52 = vrot.slane %v346_v49, 2  ;;  %v357_v54 = vrot.slane %v338_v51, 4  ;;  %v335_v55 = vpop.xlane.xlu0 %334 }
 0x180   :  { %465 = vpow2.f32 %v191_v48  ;;  %v341_v57 = vrot.slane %v340_v50, 2  ;;  %v351_v58 = vrot.slane %v335_v55, 4 }
 0x181   :  { %v348_v59 = vmax.f32 %v346_v49, %v347_v52  ;;  %v358_v12 = vmax.f32 %v338_v51, %v357_v54 }
 0x182   :  { %v342_v13 = vmax.f32 %v340_v50, %v341_v57  ;;  %v352_v62 = vmax.f32 %v335_v55, %v351_v58 }
 0x183   :  { %v349_v16 = vrot.slane %v348_v59, 1  ;;  %v359_v63 = vrot.slane %v358_v12, 2 }
 0x184   :  { %v343_v17 = vrot.slane %v342_v13, 1  ;;  %v353_v3 = vrot.slane %v352_v62, 2 }
 0x185   :  { %v725_v4 = vpop.eup %459  ;;  %v350_v6 = vmax.f32 %v348_v59, %v349_v16  ;;  %v360_v7 = vmax.f32 %v358_v12, %v359_v63 }
 0x186   :  { %v727_v8 = vpop.eup %461  ;;  %v201_v10 = vrot.slane %v725_v4, 4  ;;  %v344_v11 = vmax.f32 %v342_v13, %v343_v17  ;;  %v354_v14 = vmax.f32 %v352_v62, %v353_v3 }
 0x187   :  { %v195_v15 = vrot.slane %v727_v8, 4  ;;  %v364_v18 = vsub.f32 %v332_v40, %v350_v6  ;;  %v361_v19 = vrot.slane %v360_v7, 1 }
 0x188   :  { %v363_v21 = vsub.f32 %v329_v45, %v344_v11  ;;  %v355_v22 = vrot.slane %v354_v14, 1  ;;  %v202_v0 = vadd.f32 %v725_v4, %v201_v10 }
 0x189   :  { %v731_v23 = vpop.eup %463  ;;  %v369_v24 = vmul.f32 1.442695, %v364_v18  ;;  %v362_v1 = vmax.f32 %v360_v7, %v361_v19  ;;  %v196_v5 = vadd.f32 %v727_v8, %v195_v15 }
 0x18a   :  { %v733_v9 = vpop.eup %465  ;;  %v213_v25 = vrot.slane %v731_v23, 4  ;;  %v367_v26 = vmul.f32 1.442695, %v363_v21  ;;  %v356_v29 = vmax.f32 %v354_v14, %v355_v22  ;;  %v203_v34 = vrot.slane %v202_v0, 2 }
 0x18b   :  { %v207_v20 = vrot.slane %v733_v9, 4  ;;  %467 = vpow2.f32 %v369_v24  ;;  %v366_v30 = vsub.f32 %v338_v51, %v362_v1  ;;  %v197_v37 = vrot.slane %v196_v5, 2 }
 0x18c   :  { %v214_v2 = vadd.f32 %v731_v23, %v213_v25  ;;  %469 = vpow2.f32 %v367_v26  ;;  %v365_v31 = vsub.f32 %v335_v55, %v356_v29  ;;  %v204_v40 = vadd.f32 %v203_v34, %v202_v0 }
 0x18d   :  { %v208_v32 = vadd.f32 %v733_v9, %v207_v20  ;;  %v373_v33 = vmul.f32 1.442695, %v366_v30  ;;  %v198_v41 = vadd.f32 %v197_v37, %v196_v5 }
 0x18e   :  { %v371_v36 = vmul.f32 1.442695, %v365_v31  ;;  %v215_v38 = vrot.slane %v214_v2, 2  ;;  %v205_v48 = vrot.slane %v204_v40, 1 }
 0x18f   :  { %471 = vpow2.f32 %v373_v33  ;;  %v209_v39 = vrot.slane %v208_v32, 2  ;;  %v199_v50 = vrot.slane %v198_v41, 1 }
 0x190   :  { %473 = vpow2.f32 %v371_v36  ;;  %v216_v42 = vadd.f32 %v215_v38, %v214_v2  ;;  %v206_v13 = vadd.f32 %v205_v48, %v204_v40 }
 0x191   :  { %v210_v45 = vadd.f32 %v209_v39, %v208_v32  ;;  %v200_v63 = vadd.f32 %v199_v50, %v198_v41 }
 0x192   :  { %v217_v52 = vrot.slane %v216_v42, 1  ;;  %475 = vrcp.f32 %v206_v13 }
 0x193   :  { %v211_v57 = vrot.slane %v210_v45, 1  ;;  %477 = vrcp.f32 %v200_v63 }
 0x194   :  { %v218_v3 = vadd.f32 %v217_v52, %v216_v42 }
 0x195   :  { %v468_v44 = vpop.eup %467  ;;  %v212_v10 = vadd.f32 %v211_v57, %v210_v45 }
 0x196   :  { %v470_v46 = vpop.eup %469  ;;  %v381_v47 = vrot.slane %v468_v44, 4  ;;  %479 = vrcp.f32 %v218_v3 }
 0x197   :  { %v375_v49 = vrot.slane %v470_v46, 4  ;;  %481 = vrcp.f32 %v212_v10 }
 0x198   :  { %v382_v51 = vadd.f32 %v468_v44, %v381_v47 }
 0x199   :  { %v472_v54 = vpop.eup %471  ;;  %v376_v55 = vadd.f32 %v470_v46, %v375_v49 }
 0x19a   :  { %v474_v58 = vpop.eup %473  ;;  %v383_v59 = vrot.slane %v382_v51, 2  ;;  %v393_v12 = vrot.slane %v472_v54, 4 }
 0x19b   :  { %v377_v62 = vrot.slane %v376_v55, 2  ;;  %v387_v16 = vrot.slane %v474_v58, 4 }
 0x19c   :  { %v394_v17 = vadd.f32 %v472_v54, %v393_v12  ;;  %v384_v6 = vadd.f32 %v383_v59, %v382_v51  ;;  %v476_v5 = vpop.eup %475 }
 0x19d   :  { %v388_v7 = vadd.f32 %v474_v58, %v387_v16  ;;  %v378_v11 = vadd.f32 %v377_v62, %v376_v55  ;;  %v478_v20 = vpop.eup %477  ;;  %v224_v31 = vmul.f32 %v476_v5, %v725_v4 }
 0x19e   :  { %v395_v14 = vrot.slane %v394_v17, 2  ;;  %v385_v15 = vrot.slane %v384_v6, 1  ;;  %v223_v33 = vmul.f32 %v478_v20, %v727_v8 }
 0x19f   :  { %v389_v18 = vrot.slane %v388_v7, 2  ;;  %v379_v19 = vrot.slane %v378_v11, 1  ;;  %v228_v39 = vmul.f32 %v224_v31, %v689_v27 }
 0x1a0   :  { %v396_v21 = vadd.f32 %v395_v14, %v394_v17  ;;  %v386_v22 = vadd.f32 %v385_v15, %v384_v6  ;;  %v480_v30 = vpop.eup %479  ;;  %v227_v45 = vmul.f32 %v223_v33, %v691_v28 }
 0x1a1   :  { %v390_v24 = vadd.f32 %v389_v18, %v388_v7  ;;  %v380_v1 = vadd.f32 %v379_v19, %v378_v11  ;;  %v482_v2 = vpop.eup %481  ;;  %v226_v38 = vmul.f32 %v480_v30, %v731_v23 }
 0x1a2   :  { %v397_v0 = vrot.slane %v396_v21, 1  ;;  %483 = vrcp.f32 %v386_v22  ;;  %v225_v42 = vmul.f32 %v482_v2, %v733_v9 }
 0x1a3   :  { %v391_v25 = vrot.slane %v390_v24, 1  ;;  %485 = vrcp.f32 %v380_v1 }
 0x1a4   :  { %v398_v26 = vadd.f32 %v397_v0, %v396_v21  ;;  %v229_v27 = vmul.f32 %v225_v42, %v700_v43 }
 0x1a5   :  { %v392_v29 = vadd.f32 %v391_v25, %v390_v24 }
 0x1a6   :  { %487 = vrcp.f32 %v398_v26 }
 0x1a7   :  { %489 = vrcp.f32 %v392_v29 }
 0x1ac   :  { %v484_v32 = vpop.eup %483 }
 0x1ad   :  { %v486_v34 = vpop.eup %485  ;;  %v404_v36 = vmul.f32 %v484_v32, %v468_v44  ;;  %v230_v44 = vmul.f32 %v226_v38, %v695_v35 }
 0x1ae   :  { %v403_v37 = vmul.f32 %v486_v34, %v470_v46 }
 0x1af   :  { %v408_v40 = vmul.f32 %v404_v36, %v707_v53 }
 0x1b0   :  { %v488_v41 = vpop.eup %487  ;;  %v407_v47 = vmul.f32 %v403_v37, %v710_v56 }
 0x1b1   :  { %v490_v4 = vpop.eup %489  ;;  %v406_v48 = vmul.f32 %v488_v41, %v472_v54  ;;  %v412_v49 = vadd.f32 %v408_v40, %v228_v39 }
 0x1b2   :  { %v405_v8 = vmul.f32 %v490_v4, %v474_v58  ;;  %v411_v50 = vadd.f32 %v407_v47, %v227_v45 }
 0x1b3   :  { %v410_v23 = vmul.f32 %v406_v48, %v714_v60  ;;  %416 = vst.msk [vmem:[#allocation7 + $0x8] sm:$0xff] %vm48_vm0, %v412_v49 }
 0x1b4   :  { %v409_v53 = vmul.f32 %v405_v8, %v717_v61  ;;  %415 = vst.msk [vmem:[#allocation7] sm:$0xff] %vm48_vm0, %v411_v50 }
 0x1b5   :  { %v414_v28 = vadd.f32 %v410_v23, %v230_v44 }
 0x1b6   :  { %v413_v56 = vadd.f32 %v409_v53, %v229_v27 }
 0x1b7   :  { %418 = vst.msk [vmem:[#allocation7 + $0x18] sm:$0xff] %vm48_vm0, %v414_v28 }
 0x1b8   :  { %417 = vst.msk [vmem:[#allocation7 + $0x10] sm:$0xff] %vm48_vm0, %v413_v56 }
 0x1b9   :  { %546 = shalt.err (!%p543_p6)
}
 0x1ba   :  { %s547_s15 = scalar_lea.hbm %s775_s3, 512 }
 0x1bb   :  { %p548_p7 = scmp.ne.s32.totalorder %s775_s3, %s547_s15  ;;  %p551_p8 = scmp.lt.u32.totalorder %s547_s15, %s775_s3 }
 0x1bd   :  { %p553_p9 = pnand %p551_p8, %p548_p7 }
 0x1bf   :  { %556 = shalt.err (!%p553_p9)
}
 0x1c0   :  { %430 = dma.vmem_to_hbm [thread:$0]  %s425_s11, 512, %s775_s3, [#allocation4], %s564_s22, %s564_s22, %s565_s23  }
 0x1c1   :  { %561 = dma.done.wait [#allocation4], 512  }
 0x1c2   :  { %562 = vsyncadd [#allocation4], 4294966784 }
 0x1c3   :  { %434 = vsyncpa [#allocation3], 1 }
 0x1c4   :  { %435 = vsyncpa [#allocation6], 1 }
 0x1c5   :  { %436 = vsyncpa [#allocation4], 1 }

</bundles_post_ra>
